<compile_context>
chip_gen: v7x
topology: tpu7x:2x2x1
jax: 0.10.0
libtpu: 0.0.40
codegen_flags: <defaults>
</compile_context>

<pallas_src>
import jax
import jax.numpy as jnp
from jax.experimental import pallas as pl
from jax.experimental.pallas import tpu as pltpu

HIDDEN = 32
GROUP = 8                      # sublanes per hidden group
N_GROUPS = HIDDEN // GROUP     # 4


def _make_reg2d_kernel(chunk, n_chunks):
    def kernel(x_ref, p_ref, o_ref):
        # x_ref: (2, tile)   features on sublanes, batch on lanes
        # p_ref: (32, 5)     packed params [w1[:,0] | w1[:,1] | b1 | w2 | b2]
        # o_ref: (1, tile)   lane-dense output block
        # Hoist the tiny per-group parameter slices once per tile.
        groups = []
        for g in range(N_GROUPS):
            r0 = g * GROUP
            groups.append((p_ref[r0:r0 + GROUP, 0:1],    # w1 col 0  (8, 1)
                           p_ref[r0:r0 + GROUP, 1:2],    # w1 col 1  (8, 1)
                           p_ref[r0:r0 + GROUP, 2:3],    # b1        (8, 1)
                           p_ref[r0:r0 + GROUP, 3:4]))   # w2        (8, 1)
        b2 = p_ref[0:1, 4:5]                              # (1, 1)

        # Lane-chunked main loop: every chunk stays register resident,
        # output is stored per chunk so nothing (32, tile)-sized ever lives.
        for c in range(n_chunks):
            lo, hi = c * chunk, (c + 1) * chunk
            x0 = jnp.broadcast_to(x_ref[0:1, lo:hi], (GROUP, chunk))
            x1 = jnp.broadcast_to(x_ref[1:2, lo:hi], (GROUP, chunk))
            acc = None
            for w1c0, w1c1, b1c, w2c in groups:
                # h[j, n] = relu(w1[j,0]*x0[n] + w1[j,1]*x1[n] + b1[j])
                h = jnp.maximum(w1c0 * x0 + w1c1 * x1 + b1c, 0.0)  # (8, chunk)
                part = h * w2c
                acc = part if acc is None else acc + part
            # final 8-sublane reduce + output bias
            y = jnp.sum(acc, axis=0, keepdims=True) + b2           # (1, chunk)
            o_ref[:, lo:hi] = y.astype(o_ref.dtype)

    return kernel


def reg2d_forward(x, w1, b1, w2, b2, *, tile_n=16384, chunk_n=1024):
    """x: (N, 2) f32.  w1: (32, 2), b1: (32,), w2: (1, 32), b2: (1,)
    (PyTorch nn.Linear parameter shapes).  Returns (N, 1) f32."""
    n, fin = x.shape
    assert fin == 2
    f32 = jnp.float32
    lane = 128

    def rup(a, m):
        return ((a + m - 1) // m) * m

    # ---- tiling: lane-dense, step-overhead aware --------------------------
    n_lanes = rup(n, lane)
    tile_n = max(lane, (int(tile_n) // lane) * lane)
    tile_n = min(tile_n, n_lanes)
    # keep >=2 grid steps when the problem spans >=2 lane tiles so the
    # "parallel" grid axis can feed both v7x TensorCores
    if n_lanes >= 2 * lane:
        tile_n = min(tile_n, rup((n_lanes + 1) // 2, lane))
    # inner register-resident chunk; tile must be a multiple of it
    chunk = max(lane, min((int(chunk_n) // lane) * lane, tile_n))
    tile_n = (tile_n // chunk) * chunk
    n_pad = rup(n, tile_n)
    grid = (n_pad // tile_n,)

    # ---- fused feature-major / padded producer (single pass) --------------
    if n_pad == n:
        x_t = x.T.astype(f32)
    else:
        x_t = jnp.zeros((2, n_pad), f32).at[:, :n].set(x.T.astype(f32))

    # ---- pack all parameters into one (32, 5) block ------------------------
    params = jnp.stack(
        [w1[:, 0], w1[:, 1], b1, w2.reshape(HIDDEN),
         jnp.broadcast_to(b2.reshape(1), (HIDDEN,))],
        axis=1).astype(f32)                                        # (32, 5)

    kernel = _make_reg2d_kernel(chunk, tile_n // chunk)

    out_t = pl.pallas_call(
        kernel,
        out_shape=jax.ShapeDtypeStruct((1, n_pad), f32),
        grid_spec=pltpu.PrefetchScalarGridSpec(
            num_scalar_prefetch=0,
            grid=grid,
            in_specs=[
                pl.BlockSpec((2, tile_n), lambda i: (0, i)),       # x tile (lane-dense)
                pl.BlockSpec((HIDDEN, 5), lambda i: (0, 0)),       # packed params
            ],
            out_specs=pl.BlockSpec((1, tile_n), lambda i: (0, i)),
        ),
        compiler_params=pltpu.CompilerParams(
            dimension_semantics=("parallel",),           # megacore sharding on v7x
            vmem_limit_bytes=32 * 1024 * 1024,           # explicit budget, big headroom
        ),
        cost_estimate=pl.CostEstimate(
            flops=224 * n_pad,
            transcendentals=0,
            bytes_accessed=12 * n_pad + 4 * HIDDEN * 5,
        ),
    )(x_t, params)

    # Back to the PyTorch layout (N, 1), dropping lane padding.
    return out_t[0, :n].reshape(n, 1)


def reference_forward(x, w1, b1, w2, b2):
    h = jnp.maximum(x @ w1.T + b1, 0.0)
    return h @ w2.T + b2


if __name__ == "__main__":
    key = jax.random.PRNGKey(0)
    k_x, k_w1, k_b1, k_w2, k_b2 = jax.random.split(key, 5)

    # Same shape as the original script's data: 500 rows of 2 features
    # (also exercises the padding path and a 2-step "parallel" grid).
    N = 500
    x = jax.random.uniform(k_x, (N, 2), dtype=jnp.float32)

    # nn.Linear-style init: uniform in [-1/sqrt(fan_in), 1/sqrt(fan_in)].
    bound1 = 1.0 / jnp.sqrt(2.0)
    w1 = jax.random.uniform(k_w1, (32, 2), minval=-bound1, maxval=bound1, dtype=jnp.float32)
    b1 = jax.random.uniform(k_b1, (32,), minval=-bound1, maxval=bound1, dtype=jnp.float32)
    bound2 = 1.0 / jnp.sqrt(32.0)
    w2 = jax.random.uniform(k_w2, (1, 32), minval=-bound2, maxval=bound2, dtype=jnp.float32)
    b2 = jax.random.uniform(k_b2, (1,), minval=-bound2, maxval=bound2, dtype=jnp.float32)

    out = jax.block_until_ready(reg2d_forward(x, w1, b1, w2, b2))

    ref = reference_forward(x, w1, b1, w2, b2)
    assert out.shape == (N, 1), out.shape
    assert jnp.allclose(out, ref, atol=1e-5, rtol=1e-5), "mismatch vs reference"

    print("KERNEL_OK")
</pallas_src>

<mosaic_0001>
module attributes {stable_mosaic.version = 11 : i64} {
  func.func @kernel(%arg0: i32, %arg1: memref<2x256xf32, #tpu.memory_space<vmem>>, %arg2: memref<32x5xf32, #tpu.memory_space<vmem>>, %arg3: memref<1x256xf32, #tpu.memory_space<vmem>>) attributes {dimension_semantics = [#tpu.dimension_semantics<parallel>], iteration_bounds = array<i64: 2>, scalar_prefetch = 0 : i64, scratch_operands = 0 : i64, tpu.core_type = #tpu.core_type<tc>, window_params = [{transform_indices = @transform_0, window_bounds = array<i64: 2, 256>}, {pipeline_mode = #tpu.pipeline_mode<synchronous>, transform_indices = @transform_1, window_bounds = array<i64: 32, 5>}, {transform_indices = @transform_2, window_bounds = array<i64: 1, 256>}]} {
    %c0 = arith.constant 0 : index
    %c0_0 = arith.constant 0 : index
    %0 = vector.load %arg2[%c0, %c0_0] : memref<32x5xf32, #tpu.memory_space<vmem>>, vector<8x1xf32>
    %c0_1 = arith.constant 0 : index
    %c1 = arith.constant 1 : index
    %1 = vector.load %arg2[%c0_1, %c1] : memref<32x5xf32, #tpu.memory_space<vmem>>, vector<8x1xf32>
    %c0_2 = arith.constant 0 : index
    %c2 = arith.constant 2 : index
    %2 = vector.load %arg2[%c0_2, %c2] : memref<32x5xf32, #tpu.memory_space<vmem>>, vector<8x1xf32>
    %c0_3 = arith.constant 0 : index
    %c3 = arith.constant 3 : index
    %3 = vector.load %arg2[%c0_3, %c3] : memref<32x5xf32, #tpu.memory_space<vmem>>, vector<8x1xf32>
    %c8 = arith.constant 8 : index
    %c0_4 = arith.constant 0 : index
    %4 = vector.load %arg2[%c8, %c0_4] : memref<32x5xf32, #tpu.memory_space<vmem>>, vector<8x1xf32>
    %c8_5 = arith.constant 8 : index
    %c1_6 = arith.constant 1 : index
    %5 = vector.load %arg2[%c8_5, %c1_6] : memref<32x5xf32, #tpu.memory_space<vmem>>, vector<8x1xf32>
    %c8_7 = arith.constant 8 : index
    %c2_8 = arith.constant 2 : index
    %6 = vector.load %arg2[%c8_7, %c2_8] : memref<32x5xf32, #tpu.memory_space<vmem>>, vector<8x1xf32>
    %c8_9 = arith.constant 8 : index
    %c3_10 = arith.constant 3 : index
    %7 = vector.load %arg2[%c8_9, %c3_10] : memref<32x5xf32, #tpu.memory_space<vmem>>, vector<8x1xf32>
    %c16 = arith.constant 16 : index
    %c0_11 = arith.constant 0 : index
    %8 = vector.load %arg2[%c16, %c0_11] : memref<32x5xf32, #tpu.memory_space<vmem>>, vector<8x1xf32>
    %c16_12 = arith.constant 16 : index
    %c1_13 = arith.constant 1 : index
    %9 = vector.load %arg2[%c16_12, %c1_13] : memref<32x5xf32, #tpu.memory_space<vmem>>, vector<8x1xf32>
    %c16_14 = arith.constant 16 : index
    %c2_15 = arith.constant 2 : index
    %10 = vector.load %arg2[%c16_14, %c2_15] : memref<32x5xf32, #tpu.memory_space<vmem>>, vector<8x1xf32>
    %c16_16 = arith.constant 16 : index
    %c3_17 = arith.constant 3 : index
    %11 = vector.load %arg2[%c16_16, %c3_17] : memref<32x5xf32, #tpu.memory_space<vmem>>, vector<8x1xf32>
    %c24 = arith.constant 24 : index
    %c0_18 = arith.constant 0 : index
    %12 = vector.load %arg2[%c24, %c0_18] : memref<32x5xf32, #tpu.memory_space<vmem>>, vector<8x1xf32>
    %c24_19 = arith.constant 24 : index
    %c1_20 = arith.constant 1 : index
    %13 = vector.load %arg2[%c24_19, %c1_20] : memref<32x5xf32, #tpu.memory_space<vmem>>, vector<8x1xf32>
    %c24_21 = arith.constant 24 : index
    %c2_22 = arith.constant 2 : index
    %14 = vector.load %arg2[%c24_21, %c2_22] : memref<32x5xf32, #tpu.memory_space<vmem>>, vector<8x1xf32>
    %c24_23 = arith.constant 24 : index
    %c3_24 = arith.constant 3 : index
    %15 = vector.load %arg2[%c24_23, %c3_24] : memref<32x5xf32, #tpu.memory_space<vmem>>, vector<8x1xf32>
    %c0_25 = arith.constant 0 : index
    %c4 = arith.constant 4 : index
    %16 = vector.load %arg2[%c0_25, %c4] : memref<32x5xf32, #tpu.memory_space<vmem>>, vector<1x1xf32>
    %c0_26 = arith.constant 0 : index
    %c0_27 = arith.constant 0 : index
    %17 = vector.load %arg1[%c0_26, %c0_27] : memref<2x256xf32, #tpu.memory_space<vmem>>, vector<1x256xf32>
    %18 = vector.shape_cast %17 : vector<1x256xf32> to vector<1x256xf32>
    %19 = vector.broadcast %18 : vector<1x256xf32> to vector<8x256xf32>
    %c1_28 = arith.constant 1 : index
    %c0_29 = arith.constant 0 : index
    %20 = vector.load %arg1[%c1_28, %c0_29] : memref<2x256xf32, #tpu.memory_space<vmem>>, vector<1x256xf32>
    %21 = vector.shape_cast %20 : vector<1x256xf32> to vector<1x256xf32>
    %22 = vector.broadcast %21 : vector<1x256xf32> to vector<8x256xf32>
    %23 = vector.broadcast %0 : vector<8x1xf32> to vector<8x256xf32>
    %24 = arith.mulf %23, %19 : vector<8x256xf32>
    %25 = vector.broadcast %1 : vector<8x1xf32> to vector<8x256xf32>
    %26 = arith.mulf %25, %22 : vector<8x256xf32>
    %27 = arith.addf %24, %26 : vector<8x256xf32>
    %28 = vector.broadcast %2 : vector<8x1xf32> to vector<8x256xf32>
    %29 = arith.addf %27, %28 : vector<8x256xf32>
    %cst = arith.constant 0.000000e+00 : f32
    %30 = vector.broadcast %cst : f32 to vector<8x256xf32>
    %31 = arith.maximumf %29, %30 : vector<8x256xf32>
    %32 = vector.broadcast %3 : vector<8x1xf32> to vector<8x256xf32>
    %33 = arith.mulf %31, %32 : vector<8x256xf32>
    %34 = vector.broadcast %4 : vector<8x1xf32> to vector<8x256xf32>
    %35 = arith.mulf %34, %19 : vector<8x256xf32>
    %36 = vector.broadcast %5 : vector<8x1xf32> to vector<8x256xf32>
    %37 = arith.mulf %36, %22 : vector<8x256xf32>
    %38 = arith.addf %35, %37 : vector<8x256xf32>
    %39 = vector.broadcast %6 : vector<8x1xf32> to vector<8x256xf32>
    %40 = arith.addf %38, %39 : vector<8x256xf32>
    %cst_30 = arith.constant 0.000000e+00 : f32
    %41 = vector.broadcast %cst_30 : f32 to vector<8x256xf32>
    %42 = arith.maximumf %40, %41 : vector<8x256xf32>
    %43 = vector.broadcast %7 : vector<8x1xf32> to vector<8x256xf32>
    %44 = arith.mulf %42, %43 : vector<8x256xf32>
    %45 = arith.addf %33, %44 : vector<8x256xf32>
    %46 = vector.broadcast %8 : vector<8x1xf32> to vector<8x256xf32>
    %47 = arith.mulf %46, %19 : vector<8x256xf32>
    %48 = vector.broadcast %9 : vector<8x1xf32> to vector<8x256xf32>
    %49 = arith.mulf %48, %22 : vector<8x256xf32>
    %50 = arith.addf %47, %49 : vector<8x256xf32>
    %51 = vector.broadcast %10 : vector<8x1xf32> to vector<8x256xf32>
    %52 = arith.addf %50, %51 : vector<8x256xf32>
    %cst_31 = arith.constant 0.000000e+00 : f32
    %53 = vector.broadcast %cst_31 : f32 to vector<8x256xf32>
    %54 = arith.maximumf %52, %53 : vector<8x256xf32>
    %55 = vector.broadcast %11 : vector<8x1xf32> to vector<8x256xf32>
    %56 = arith.mulf %54, %55 : vector<8x256xf32>
    %57 = arith.addf %45, %56 : vector<8x256xf32>
    %58 = vector.broadcast %12 : vector<8x1xf32> to vector<8x256xf32>
    %59 = arith.mulf %58, %19 : vector<8x256xf32>
    %60 = vector.broadcast %13 : vector<8x1xf32> to vector<8x256xf32>
    %61 = arith.mulf %60, %22 : vector<8x256xf32>
    %62 = arith.addf %59, %61 : vector<8x256xf32>
    %63 = vector.broadcast %14 : vector<8x1xf32> to vector<8x256xf32>
    %64 = arith.addf %62, %63 : vector<8x256xf32>
    %cst_32 = arith.constant 0.000000e+00 : f32
    %65 = vector.broadcast %cst_32 : f32 to vector<8x256xf32>
    %66 = arith.maximumf %64, %65 : vector<8x256xf32>
    %67 = vector.broadcast %15 : vector<8x1xf32> to vector<8x256xf32>
    %68 = arith.mulf %66, %67 : vector<8x256xf32>
    %69 = arith.addf %57, %68 : vector<8x256xf32>
    %cst_33 = arith.constant dense<0.000000e+00> : vector<256xf32>
    %70 = vector.multi_reduction <add>, %69, %cst_33 [0] : vector<8x256xf32> to vector<256xf32>
    %71 = vector.shape_cast %70 : vector<256xf32> to vector<1x256xf32>
    %72 = vector.broadcast %16 : vector<1x1xf32> to vector<1x256xf32>
    %73 = arith.addf %71, %72 : vector<1x256xf32>
    %c0_34 = arith.constant 0 : index
    %c0_35 = arith.constant 0 : index
    %74 = vector.load %arg3[%c0_34, %c0_35] : memref<1x256xf32, #tpu.memory_space<vmem>>, vector<1x256xf32>
    tpu.vector_store %arg3[%c0_34, %c0_35], %73 {strides = array<i32>} : memref<1x256xf32, #tpu.memory_space<vmem>>, vector<1x256xf32>,
    return
  }
  func.func @transform_0(%arg0: i32) -> (i32, i32) {
    %c0_i32 = arith.constant 0 : i32
    %c0_i32_0 = arith.constant 0 : i32
    return %c0_i32, %arg0 : i32, i32
  }
  func.func @transform_1(%arg0: i32) -> (i32, i32) {
    %c0_i32 = arith.constant 0 : i32
    %c0_i32_0 = arith.constant 0 : i32
    %c0_i32_1 = arith.constant 0 : i32
    return %c0_i32, %c0_i32_0 : i32, i32
  }
  func.func @transform_2(%arg0: i32) -> (i32, i32) {
    %c0_i32 = arith.constant 0 : i32
    %c0_i32_0 = arith.constant 0 : i32
    return %c0_i32, %arg0 : i32, i32
  }
}

</mosaic_0001>

<bundles_post_ra>
// kernel: tpu_custom_call.1
= control target key start
LH: loop header
LB: loop body
LE: loop exit
PB: predicated region body
PF: predicated region fallthrough
CT: control target
= control target key end

     0   :  { %7 = vsyncpa [#allocation3], 0  ;;  %s694_s0 = inlined_call_operand.vmem [shape: f32[2,512], index: 0, kind: input, shape index: {}]   ;;  %s695_s1 = inlined_call_operand.vmem [shape: f32[32,5], index: 1, kind: input, shape index: {}]   ;;  %s696_s2 = inlined_call_operand.hbm [shape: f32[1,512], index: 2, kind: output, shape index: {}]  }
   0x1   :  { %9 = vsyncpa [#allocation3 + $0x1], 0  ;;  %s573_s9 = smov 0   ;;  %s575_s10 = smov 0  }
   0x2   :  { %s577_s11 = smov 0   ;;  %s579_s12 = smov 0  }
   0x3 LB: > { %s594_s13 = sadd.s32 4294967295, %s549_s12   ;;  %s413_s14 = sadd.s32 4294967294, %s549_s12   ;;  %s549_s12 = sphi %s579_s12, %s702_s12   ;;  %s545_s11 = sphi %s577_s11, %s701_s11   ;;  %s541_s10 = sphi %s575_s10, %s700_s10   ;;  %s537_s9 = sphi %s573_s9, %s699_s9  }
   0x4   : > { %s598_s15 = sadd.s32 1, %s549_s12   ;;  %s69_s16 = sadd.s32 1, %s545_s11 }
   0x5   : > { %s66_s17 = ssub.s32 %s549_s12, %s598_s15  ;;  %p79_p0 = scmp.ne.s32.totalorder %s545_s11, %s541_s10 }
   0x6   : > { %p67_p1 = scmp.eq.s32.totalorder %s66_s17, 0  ;;  %p80_p2 = scmp.eq.s32.totalorder %s594_s13, 1 }
   0x7   : > { %p85_p3 = scmp.ne.s32.totalorder %s541_s10, %s537_s9  ;;  %p86_p4 = scmp.eq.s32.totalorder %s413_s14, 1 }
   0x8   : > { %s609_s18 = scalar_select %p67_p1, %s545_s11, %s69_s16  }
   0x9   : > { %p611_p5 = por %p80_p2, %p79_p0  ;;  %p615_p6 = por %p86_p4, %p85_p3 }
   0xa   : > { %p416_p7 = scmp.ge.s32.totalorder %s549_s12, 1  ;;  %p116_p8 = scmp.lt.s32.totalorder %s549_s12, 3 }
   0xc   : > { %p117_p9 = pnand %p416_p7, %p116_p8 }
   0xd   : > { %v146_v0 = vld [vmem:[%s695_s1 + $0x8] sm:$0xff] (!%p117_p9)  ;;  %v145_v1 = vld [vmem:[%s695_s1] sm:$0xff] (!%p117_p9)  ;;  %v551_v2 = vmov (!%p117_p9), 0   ;;  %v552_v3 = vmov (!%p117_p9), 1   ;;  %v147_v4 = vld [vmem:[%s695_s1 + $0x10] sm:$0xff] (!%p117_p9)  ;;  %v553_v5 = vmov (!%p117_p9), 2   ;;  %v152_v13 = vlaneseq (!%p117_p9) }
   0xe   : > { %120 = sbr.rel (%p117_p9) target bundleno = 223 (0xdf), region = 28  ;;  %474 = vset.pattern.permute.xlu1 (!%p117_p9), %v551_v2  ;;  %472 = vset.pattern.permute.xlu0 (!%p117_p9), %v551_v2  ;;  %v148_v6 = vld [vmem:[%s695_s1 + $0x18] sm:$0xff] (!%p117_p9)  ;;  %v554_v7 = vmov (!%p117_p9), 3   ;;  %v555_v8 = vmov (!%p117_p9), 4   ;;  %v149_v9 = vld [vmem:[%s695_s1] sm:$0x1] (!%p117_p9) }
   0xf   : > { %206 = vperm.xlu1 (!%p117_p9), %474, %v146_v0   ;;  %177 = vperm.xlu0 (!%p117_p9), %472, %v145_v1   ;;  %s418_s3 = sshll.u32 (!%p117_p9), %s594_s13, 1  ;;  %v638_v16 = vshrl.u32 (!%p117_p9), %v152_v13, 7  ;;  %s135_s8 = sand.u32 (!%p117_p9), 1, %s541_s10   ;;  %vm336_vm0 = vcmp.lt.s32.totalorder (!%p117_p9), %v152_v13, 256 }
  0x10   : > { %p139_p10 = scmp.lt.s32.totalorder (!%p117_p9), %s418_s3, 3  ;;  %s417_s14 = sshll.u32 (!%p117_p9), %s135_s8, 1 }
  0x11   : > { %v154_v18 = vsub.s32 (!%p117_p9), 0, %v638_v16  ;;  %v158_v19 = vsub.s32 (!%p117_p9), 1, %v638_v16  ;;  %s426_s16 = sshll.u32 (!%p117_p9), %s594_s13, 5  ;;  %s137_s17 = scalar_lea.vmem (!%p117_p9), [#allocation2], %s417_s14 }
  0x12   : > { %s354_s21 = sshll.u32 (!%p117_p9), %s137_s17, 4  ;;  %s652_s24 = scalar_lea.hbm (!%p117_p9), %s696_s2, %s426_s16  ;;  %s654_s21 = int_to_ptr.vmem [resolvable:$true] %s354_s21 }
  0x13   : > { %475 = vset.pattern.permute.xlu1 (!%p117_p9), %v552_v3  ;;  %473 = vset.pattern.permute.xlu0 (!%p117_p9), %v552_v3  ;;  %s340_s25 = scalar_lea.sflag (!%p117_p9), [#allocation3], %s135_s8  ;;  %s487_s26 = scalar_lea.vmem (!%p117_p9), %s654_s21, 32 }
  0x14   : > { %212 = vperm.xlu1 (!%p117_p9), %475, %v146_v0   ;;  %183 = vperm.xlu0 (!%p117_p9), %473, %v145_v1   ;;  %p488_p11 = scmp.ne.s32.totalorder (!%p117_p9), %s654_s21, %s487_s26  ;;  %s557_s13 = smov (!%p117_p9), [#allocation2]  }
  0x15   : > { %s704_s3 = smov (!%p139_p10, %s418_s3), 3  ;;  %s491_s27 = sshll.u32 %s557_s13, 4  ;;  %s492_s27 = int_to_ptr.vmem [resolvable:$false] %s491_s27 }
  0x16   : > { %s419_s4 = sshll.u32 %s704_s3, 1  ;;  %p489_p12 = pnand %p488_p11, %p611_p5 }
  0x17   : > { %s142_s7 = scalar_lea.vmem %s694_s0, %s419_s4  ;;  %s493_s28 = scalar_lea.vmem %s492_s27, 64 }
  0x18   : > { %476 = vset.pattern.permute.xlu1 %v551_v2  ;;  %243 = vperm.xlu0 %473, %v147_v4   ;;  %v150_v20 = vld [vmem:[%s142_s7] ss:$2 sm:$0x3]  ;;  %v420_v21 = vld [vmem:[%s142_s7 + $0x1] ss:$2 sm:$0x3]  ;;  %p490_p13 = pneg %p489_p12  ;;  %p494_p0 = scmp.lt.s32.totalorder %s654_s21, %s492_s27 }
  0x19   : > { %237 = vperm.xlu1 %476, %v147_v4   ;;  %v155_v24 = vrot.slane %v150_v20, %v154_v18  ;;  %v159_v25 = vrot.slane %v150_v20, %v158_v19  ;;  %v168_v26 = vrot.slane %v420_v21, %v154_v18  ;;  %v172_v27 = vrot.slane %v420_v21, %v158_v19  ;;  %p495_p1 = scmp.lt.s32.totalorder %s493_s28, %s487_s26 }
  0x1b   : > { %p496_p2 = por %p495_p1, %p494_p0 }
  0x1c   : > { %478 = vset.pattern.permute.xlu0 %v553_v5 }
  0x1d   : > { %477 = vset.pattern.permute.xlu1 %v553_v5  ;;  %220 = vperm.xlu0 %478, %v146_v0   ;;  %p497_p3 = pnand %p496_p2, %p490_p13 }
  0x1e   : > { %191 = vperm.xlu1 %477, %v145_v1  }
  0x21   : > { %251 = vperm.xlu0 %478, %v147_v4  }
  0x22   : > { %479 = vset.pattern.permute.xlu1 %v551_v2 }
  0x23   : > { %268 = vperm.xlu1 %479, %v148_v6  }
  0x25   : > { %482 = vset.pattern.permute.xlu0 %v554_v7 }
  0x26   : > { %228 = vperm.xlu0 %482, %v146_v0  }
  0x27   : > { %480 = vset.pattern.permute.xlu1 %v552_v3 }
  0x28   : > { %274 = vperm.xlu1 %480, %v148_v6  }
  0x2a   : > { %290 = vperm.xlu0 %482, %v148_v6  }
  0x2c   : > { %481 = vset.pattern.permute.xlu1 %v554_v7 }
  0x2d   : > { %199 = vperm.xlu1 %481, %v145_v1  }
  0x2e   : > { %486 = vset.pattern.permute.xlu0 %v555_v8 }
  0x31   : > { %483 = vset.pattern.permute.xlu1 %v553_v5 }
  0x32   : > { %282 = vperm.xlu1 %483, %v148_v6  }
  0x36   : > { %484 = vset.pattern.permute.xlu1 %v554_v7 }
  0x37   : > { %259 = vperm.xlu1 %484, %v147_v4  }
  0x3b   : > { %485 = vset.pattern.permute.xlu1 %v555_v8 }
  0x3c   : > { %311 = vperm.xlu1 %485, %v149_v9  }
  0x8e   : > { %v207_v10 = vpop.permute.xlu1 %206  ;;  %v178_v12 = vpop.permute.xlu0 %177 }
  0x8f   : > { %v180_v28 = vmul.f32 %v178_v12, %v155_v24  ;;  %v181_v29 = vmul.f32 %v178_v12, %v159_v25  ;;  %v209_v42 = vmul.f32 %v207_v10, %v155_v24  ;;  %v210_v43 = vmul.f32 %v207_v10, %v159_v25 }
  0x93   : > { %v213_v11 = vpop.permute.xlu1 %212  ;;  %v184_v15 = vpop.permute.xlu0 %183 }
  0x94   : > { %v186_v30 = vmul.f32 %v184_v15, %v168_v26  ;;  %v187_v31 = vmul.f32 %v184_v15, %v172_v27  ;;  %v215_v34 = vmul.f32 %v213_v11, %v168_v26  ;;  %v216_v35 = vmul.f32 %v213_v11, %v172_v27 }
  0x96   : > { %v188_v36 = vadd.f32 %v186_v30, %v180_v28  ;;  %v189_v37 = vadd.f32 %v187_v31, %v181_v29  ;;  %v217_v48 = vadd.f32 %v215_v34, %v209_v42  ;;  %v218_v49 = vadd.f32 %v216_v35, %v210_v43 }
  0x97   : > { %v244_v22 = vpop.permute.xlu0 %243 }
  0x98   : > { %v238_v14 = vpop.permute.xlu1 %237  ;;  %v246_v40 = vmul.f32 %v244_v22, %v168_v26  ;;  %v247_v41 = vmul.f32 %v244_v22, %v172_v27 }
  0x99   : > { %v240_v38 = vmul.f32 %v238_v14, %v155_v24  ;;  %v241_v39 = vmul.f32 %v238_v14, %v159_v25 }
  0x9b   : > { %v248_v52 = vadd.f32 %v246_v40, %v240_v38  ;;  %v249_v53 = vadd.f32 %v247_v41, %v241_v39 }
  0x9c   : > { %v221_v32 = vpop.permute.xlu0 %220 }
  0x9d   : > { %v192_v17 = vpop.permute.xlu1 %191  ;;  %v223_v56 = vadd.f32 %v221_v32, %v217_v48  ;;  %v224_v57 = vadd.f32 %v221_v32, %v218_v49  ;;  %v556_v32 = vmov 1966171168  }
  0x9e   : > { %v194_v50 = vadd.f32 %v192_v17, %v188_v36  ;;  %v195_v51 = vadd.f32 %v192_v17, %v189_v37 }
  0x9f   : > { %v225_v4 = vmax.f32 %v223_v56, 0.0  ;;  %v226_v5 = vmax.f32 %v224_v57, 0.0 }
  0xa0   : > { %v252_v44 = vpop.permute.xlu0 %251  ;;  %v196_v62 = vmax.f32 %v194_v50, 0.0  ;;  %v197_v63 = vmax.f32 %v195_v51, 0.0 }
  0xa1   : > { %v254_v58 = vadd.f32 %v252_v44, %v248_v52  ;;  %v255_v59 = vadd.f32 %v252_v44, %v249_v53 }
  0xa2   : > { %v269_v23 = vpop.permute.xlu1 %268 }
  0xa3   : > { %v271_v54 = vmul.f32 %v269_v23, %v155_v24  ;;  %v272_v55 = vmul.f32 %v269_v23, %v159_v25  ;;  %v256_v8 = vmax.f32 %v254_v58, 0.0  ;;  %v257_v9 = vmax.f32 %v255_v59, 0.0 }
  0xa5   : > { %v229_v1 = vpop.permute.xlu0 %228 }
  0xa6   : > { %v231_v10 = vmul.f32 %v229_v1, %v225_v4  ;;  %v232_v11 = vmul.f32 %v229_v1, %v226_v5 }
  0xa7   : > { %v275_v33 = vpop.permute.xlu1 %274 }
  0xa8   : > { %v277_v45 = vmul.f32 %v275_v33, %v168_v26  ;;  %v278_v46 = vmul.f32 %v275_v33, %v172_v27  ;;  %v320_v33 = vunpack.c.l.s4 %v556_v32 }
  0xa9   : > { %v291_v15 = vpop.permute.xlu0 %290 }
  0xaa   : > { %v279_v60 = vadd.f32 %v277_v45, %v271_v54  ;;  %v280_v61 = vadd.f32 %v278_v46, %v272_v55  ;;  %v321_v38 = vunpack.c.0.s8 %v320_v33 }
  0xac   : > { %v200_v47 = vpop.permute.xlu1 %199  ;;  %v324_v44 = vsub.s32 %v321_v38, %v638_v16 }
  0xad   : > { %v202_v6 = vmul.f32 %v200_v47, %v196_v62  ;;  %v203_v7 = vmul.f32 %v200_v47, %v197_v63 }
  0xaf   : > { %v233_v18 = vadd.f32 %v231_v10, %v202_v6  ;;  %v234_v19 = vadd.f32 %v232_v11, %v203_v7 }
  0xb1   : > { %v283_v0 = vpop.permute.xlu1 %282 }
  0xb2   : > { %v285_v2 = vadd.f32 %v283_v0, %v279_v60  ;;  %v286_v3 = vadd.f32 %v283_v0, %v280_v61 }
  0xb4   : > { %v287_v12 = vmax.f32 %v285_v2, 0.0  ;;  %v288_v14 = vmax.f32 %v286_v3, 0.0 }
  0xb6   : > { %v260_v17 = vpop.permute.xlu1 %259  ;;  %v293_v22 = vmul.f32 %v291_v15, %v287_v12  ;;  %v294_v23 = vmul.f32 %v291_v15, %v288_v14 }
  0xb7   : > { %v262_v20 = vmul.f32 %v260_v17, %v256_v8  ;;  %v263_v21 = vmul.f32 %v260_v17, %v257_v9 }
  0xb9   : > { %v264_v24 = vadd.f32 %v262_v20, %v233_v18  ;;  %v265_v25 = vadd.f32 %v263_v21, %v234_v19 }
  0xbb   : > { %v295_v26 = vadd.f32 %v293_v22, %v264_v24  ;;  %v296_v27 = vadd.f32 %v294_v23, %v265_v25  ;;  %v312_v41 = vpop.permute.xlu1 %311 }
  0xbd   : > { %v297_v28 = vrot.slane %v295_v26, 4  ;;  %v303_v29 = vrot.slane %v296_v27, 4 }
  0xbf   : > { %v298_v30 = vadd.f32 %v297_v28, %v295_v26  ;;  %v304_v31 = vadd.f32 %v303_v29, %v296_v27 }
  0xc1   : > { %v299_v34 = vrot.slane %v298_v30, 2  ;;  %v305_v35 = vrot.slane %v304_v31, 2 }
  0xc3   : > { %v300_v36 = vadd.f32 %v299_v34, %v298_v30  ;;  %v306_v37 = vadd.f32 %v305_v35, %v304_v31 }
  0xc5   : > { %v301_v39 = vrot.slane %v300_v36, 1  ;;  %v307_v40 = vrot.slane %v306_v37, 1 }
  0xc7   : > { %v302_v42 = vadd.f32 %v301_v39, %v300_v36  ;;  %v308_v43 = vadd.f32 %v307_v40, %v306_v37 }
  0xc9   : > { %v314_v45 = vadd.f32 %v312_v41, %v302_v42  ;;  %v315_v46 = vadd.f32 %v312_v41, %v308_v43 }
  0xcb   : > { %v318_v47 = vcombine.low %v314_v45, %v315_v46 }
  0xcd   : > { %v325_v48 = vrot.slane %v318_v47, %v324_v44 }
  0xcf   : > { %v332_v49 = vrot.slane %v325_v48, %v324_v44 }
  0xd1   : > { %338 = vst.msk [vmem:[%s137_s17] sm:$0x3] %vm336_vm0, %v332_v49 }
  0xd2   : > { %500 = shalt.err (!%p497_p3)
}
  0xd3   : > { %s501_s29 = scalar_lea.hbm %s652_s24, 32  ;;  %s505_s4 = scalar_lea.hbm %s696_s2, 64 }
  0xd4   : > { %p502_p4 = scmp.ne.s32.totalorder %s652_s24, %s501_s29  ;;  %p506_p9 = scmp.lt.u32.totalorder %s652_s24, %s696_s2 }
  0xd5   : > { %p507_p10 = scmp.lt.u32.totalorder %s505_s4, %s501_s29  ;;  %p509_p12 = scmp.lt.u32.totalorder %s501_s29, %s652_s24 }
  0xd6   : > { %p503_p7 = pnand %p502_p4, %p611_p5 }
  0xd7   : > { %p508_p11 = por %p507_p10, %p506_p9 }
  0xd8   : > { %p504_p8 = pneg %p503_p7 }
  0xd9   : > { %p510_p13 = por %p509_p12, %p508_p11 }
  0xdb   : > { %p511_p0 = pnand %p510_p13, %p504_p8 }
  0xdd   : > { %514 = shalt.err (!%p511_p0)
}
  0xde   : > { %427 = dma.vmem_to_hbm [thread:$0]  (%p611_p5), %s654_s21, 32, %s652_s24, %s340_s25  }
  0xdf PF: > { %p433_p1 = scmp.ge.s32.totalorder %s549_s12, 2  ;;  %s366_s7 = sand.u32 1, %s537_s9  }
  0xe0   : > { %s367_s8 = scalar_lea.sflag [#allocation3], %s366_s7 }
  0xe1   : > { %p430_p2 = pnand %p433_p1, %p615_p6 }
  0xe3   : > { %532 = dma.done.wait (!%p430_p2), %s367_s8, 32  }
  0xe4   : > { %534 = vsyncadd (!%p430_p2), %s367_s8, 4294967264  ;;  %p12_p3 = scmp.ge.s32.totalorder %s598_s15, 4   ;;  %s699_s9 = smov %s541_s10 }
  0xe5   : > { %s700_s10 = smov %s545_s11  ;;  %s701_s11 = smov %s609_s18 }
  0xe6   : > { %s702_s12 = smov %s598_s15  ;;  %14 = sbr.rel (!%p12_p3) target bundleno = 3 (0x3), region = 64 }
  0xed   :  { %372 = vsyncpa [#allocation3], 1 }
  0xee   :  { %374 = vsyncpa [#allocation3 + $0x1], 1 }

</bundles_post_ra>
